<compile_context>
chip_gen: v7x
topology: tpu7x:2x2x1
jax: 0.10.0
libtpu: 0.0.40
codegen_flags: <defaults>
</compile_context>

<pallas_src>
import functools
import math

import jax
import jax.numpy as jnp
from jax import lax
from jax.experimental import pallas as pl
from jax.experimental.pallas import tpu as pltpu


# ----------------------------------------------------------------------------
# Kernel
# ----------------------------------------------------------------------------
def _label_smoothing_kernel(x_ref, tgt_ref, part_ref, *, padding_idx,
                            confidence, smooth_val):
    x = x_ref[...]                                # (TN, V) log-probs, orig dtype
    tgt = tgt_ref[...]                            # (TN, 1) int32 labels
    mask = tgt != padding_idx                     # (TN, 1) valid-token mask
    tgt_c = jnp.where(mask, tgt, 0)               # masked_fill(mask==0, 0)

    # Per valid row:  sum_j coeff_j * x_j
    #   = smooth_val * sum_j x_j + (confidence - smooth_val) * x[target]
    col = lax.broadcasted_iota(jnp.int32, x.shape, 1)
    row_sums = jnp.sum(x, axis=1, keepdims=True, dtype=jnp.float32)
    tgt_vals = jnp.sum(jnp.where(col == tgt_c, x, 0.0),
                       axis=1, keepdims=True, dtype=jnp.float32)
    per_row = (jnp.float32(smooth_val) * row_sums
               + jnp.float32(confidence - smooth_val) * tgt_vals)

    # Select (not multiply): padding rows AND the garbage rows of the ragged
    # tail block (targets there were padded with padding_idx) contribute 0,
    # even if the undefined x values are inf/NaN.
    part = jnp.sum(jnp.where(mask, per_row, jnp.float32(0.0)))

    # Lane-dense (1, 8, 128) store of the block partial (unmasked vst).
    part_ref[...] = jnp.broadcast_to(part, part_ref.shape)


# ----------------------------------------------------------------------------
# Tiling / VMEM sizing
# ----------------------------------------------------------------------------
def _round_up(x, m):
    return -(-x // m) * m


def _sublane_multiple(dtype):
    itemsize = jnp.dtype(dtype).itemsize
    if itemsize >= 4:
        return 8
    if itemsize == 2:
        return 16
    return 32


def _vmem_capacity_bytes():
    try:
        info = pltpu.get_tpu_info()
        cap = getattr(info, "vmem_capacity_bytes", None)
        if cap:
            return int(cap)
    except Exception:
        pass
    return 64 << 20   # conservative fallback (v7x per-TensorCore VMEM)


def _choose_tiling(n_rows, vocab, dtype, *, min_steps=4):
    """Return (tile_rows, grid, vmem_limit_bytes)."""
    itemsize = jnp.dtype(dtype).itemsize
    align = _sublane_multiple(dtype)
    vmem_cap = _vmem_capacity_bytes()

    # Per-pipeline-stage budget for the streamed inputs: ~1/8 of physical
    # VMEM -> 16 MiB on 128 MiB v5e/v6e, 8 MiB on 64 MiB v7x.  The pipeline
    # double-buffers, so total input footprint stays around vmem_cap / 4.
    budget = min(max(vmem_cap // 8, 4 << 20), 16 << 20)

    # VMEM bytes per row: x row padded to a 128-lane multiple, plus the
    # (rows, 1) int32 target sliver whose minor dim pads to 128 lanes.
    row_bytes = _round_up(vocab, 128) * itemsize + 128 * 4

    rows = max(align, (budget // row_bytes) // align * align)

    # Keep >= min_steps grid steps when the input is big enough, so the
    # "parallel" axis can be split across v7x's two TensorCores and the
    # DMA/compute pipeline has something to overlap on v5e/v6e.
    per_step = _round_up(-(-n_rows // min_steps), align)
    tile_rows = max(align, min(rows, per_step))

    grid = -(-n_rows // tile_rows)

    needed = (2 * tile_rows * row_bytes       # double-buffered x + target tiles
              + 2 * 8 * 128 * 4               # double-buffered partial output
              + (4 << 20))                    # iota / select temporaries headroom
    vmem_limit = int(min(max(needed + (8 << 20), 32 << 20), (vmem_cap * 3) // 4))
    return tile_rows, grid, vmem_limit


# ----------------------------------------------------------------------------
# Wrapper
# ----------------------------------------------------------------------------
def label_smoothing_loss(x, target, *, size, padding_idx, smoothing):
    """x: (N, size) log-probs, target: (N,) int labels. Returns scalar loss."""
    N, V = x.shape
    assert V == size

    confidence = 1.0 - float(smoothing)
    smooth_val = float(smoothing) / (size - 1)

    # Trace-time constant: sum_j t_j * log(t_j) for one valid row; guarded so
    # smoothing == 0 or smoothing == 1 never touches log(0).
    C = 0.0
    if confidence > 0.0:
        C += confidence * math.log(confidence)
    if smooth_val > 0.0:
        C += (size - 1) * smooth_val * math.log(smooth_val)

    tile_rows, grid, vmem_limit = _choose_tiling(N, V, x.dtype)

    # Only the targets get padded to a whole number of tiles (cheap: N int32).
    # x is streamed UNPADDED; the ragged tail block's out-of-bounds rows hold
    # unspecified data, and the kernel drops them via the padded-target mask.
    n_pad = grid * tile_rows
    target2d = target.reshape(N, 1).astype(jnp.int32)
    if n_pad != N:
        target2d = jnp.pad(target2d, ((0, n_pad - N), (0, 0)),
                           constant_values=padding_idx)

    kernel = functools.partial(
        _label_smoothing_kernel,
        padding_idx=padding_idx,
        confidence=confidence,
        smooth_val=smooth_val)

    parts = pl.pallas_call(
        kernel,
        out_shape=jax.ShapeDtypeStruct((grid, 8, 128), jnp.float32),
        grid_spec=pltpu.PrefetchScalarGridSpec(
            num_scalar_prefetch=0,
            grid=(grid,),
            in_specs=[
                pl.BlockSpec((tile_rows, V), lambda i: (i, 0)),
                pl.BlockSpec((tile_rows, 1), lambda i: (i, 0)),
            ],
            out_specs=pl.BlockSpec((1, 8, 128), lambda i: (i, 0, 0)),
        ),
        compiler_params=pltpu.CompilerParams(
            dimension_semantics=("parallel",),
            vmem_limit_bytes=vmem_limit),
    )(x, target2d)

    # Token count does not need the kernel; compute from the raw targets.
    tokens = jnp.sum((target != padding_idx).astype(jnp.float32))
    weighted = jnp.sum(parts[:, 0, 0])
    # Matches PyTorch: divides by zero (non-finite result) if every token is
    # padding.
    return (jnp.float32(C) * tokens - weighted) / tokens


# ----------------------------------------------------------------------------
# Pure-JAX reference matching the PyTorch forward()
# ----------------------------------------------------------------------------
def _reference_loss(x, target, *, size, padding_idx, smoothing):
    confidence = 1.0 - smoothing
    smooth_val = smoothing / (size - 1)
    mask = target != padding_idx
    tokens = jnp.sum(mask)
    tgt_c = jnp.where(mask, target, 0)
    true_dist = jnp.full_like(x, smooth_val)
    true_dist = true_dist.at[jnp.arange(x.shape[0]), tgt_c].set(confidence)
    elem = jnp.where(true_dist > 0,
                     true_dist * (jnp.log(true_dist) - x), 0.0)
    elem = jnp.where(mask[:, None], elem, 0.0)
    return jnp.sum(elem) / tokens


# TODO(synk): MWER / forward_best_path are separate entry points of the
# PyTorch module and are not implemented here (only forward()).

if __name__ == "__main__":
    key = jax.random.PRNGKey(0)
    padding_idx = 0
    smoothing = 0.1

    # --- Test 1: batch=2, seq=8 -> N = 16 tokens, vocab = 32 ----------------
    kx, kt, kx2, kt2 = jax.random.split(key, 4)
    vocab, batch, seq = 32, 2, 8
    N = batch * seq
    logits = jax.random.normal(kx, (N, vocab), dtype=jnp.float32)
    x = jax.nn.log_softmax(logits, axis=-1)          # KLDivLoss expects log-probs
    target = jax.random.randint(kt, (N,), 0, vocab, dtype=jnp.int32)
    target = target.at[seq - 1].set(padding_idx)
    target = target.at[N - 1].set(padding_idx)
    target = target.at[N - 2].set(padding_idx)

    loss = label_smoothing_loss(
        x, target, size=vocab, padding_idx=padding_idx, smoothing=smoothing)
    loss = jax.block_until_ready(loss)
    ref = _reference_loss(
        x, target, size=vocab, padding_idx=padding_idx, smoothing=smoothing)
    if not jnp.allclose(loss, ref, rtol=1e-5, atol=1e-5):
        raise AssertionError(f"mismatch (aligned): pallas={loss} ref={ref}")

    # --- Test 2: ragged tail (N not a multiple of the tile, V not % 128) ----
    vocab2, N2 = 50, 19
    logits2 = jax.random.normal(kx2, (N2, vocab2), dtype=jnp.float32)
    x2 = jax.nn.log_softmax(logits2, axis=-1)
    target2 = jax.random.randint(kt2, (N2,), 0, vocab2, dtype=jnp.int32)
    target2 = target2.at[0].set(padding_idx)
    target2 = target2.at[N2 - 1].set(padding_idx)

    loss2 = label_smoothing_loss(
        x2, target2, size=vocab2, padding_idx=padding_idx, smoothing=smoothing)
    loss2 = jax.block_until_ready(loss2)
    ref2 = _reference_loss(
        x2, target2, size=vocab2, padding_idx=padding_idx, smoothing=smoothing)
    if not jnp.allclose(loss2, ref2, rtol=1e-5, atol=1e-5):
        raise AssertionError(f"mismatch (ragged): pallas={loss2} ref={ref2}")

    print("KERNEL_OK")
</pallas_src>

<mosaic_0001>
module attributes {stable_mosaic.version = 11 : i64} {
  func.func @_label_smoothing_kernel(%arg0: i32, %arg1: memref<8x32xf32, #tpu.memory_space<vmem>>, %arg2: memref<8x1xi32, #tpu.memory_space<vmem>>, %arg3: memref<1x8x128xf32, #tpu.memory_space<vmem>>) attributes {dimension_semantics = [#tpu.dimension_semantics<parallel>], iteration_bounds = array<i64: 2>, scalar_prefetch = 0 : i64, scratch_operands = 0 : i64, tpu.core_type = #tpu.core_type<tc>, window_params = [{transform_indices = @transform_0, window_bounds = array<i64: 8, 32>}, {transform_indices = @transform_1, window_bounds = array<i64: 8, 1>}, {transform_indices = @transform_2, window_bounds = array<i64: 1, 8, 128>}]} {
    %c0 = arith.constant 0 : index
    %c0_0 = arith.constant 0 : index
    %0 = vector.load %arg1[%c0, %c0_0] : memref<8x32xf32, #tpu.memory_space<vmem>>, vector<8x32xf32>
    %c0_1 = arith.constant 0 : index
    %c0_2 = arith.constant 0 : index
    %1 = vector.load %arg2[%c0_1, %c0_2] : memref<8x1xi32, #tpu.memory_space<vmem>>, vector<8x1xi32>
    %c0_i32 = arith.constant 0 : i32
    %2 = vector.broadcast %c0_i32 : i32 to vector<8x1xi32>
    %3 = arith.cmpi ne, %1, %2 : vector<8x1xi32>
    %c0_i32_3 = arith.constant 0 : i32
    %4 = vector.broadcast %c0_i32_3 : i32 to vector<8x1xi32>
    %5 = arith.select %3, %1, %4 : vector<8x1xi1>, vector<8x1xi32>
    %6 = tpu.iota {dimensions = array<i32: 1>} : vector<8x32xi32>
    %cst = arith.constant dense<0.000000e+00> : vector<8xf32>
    %7 = vector.multi_reduction <add>, %0, %cst [1] : vector<8x32xf32> to vector<8xf32>
    %8 = vector.shape_cast %7 : vector<8xf32> to vector<8x1xf32>
    %9 = vector.broadcast %5 : vector<8x1xi32> to vector<8x32xi32>
    %10 = arith.cmpi eq, %6, %9 : vector<8x32xi32>
    %cst_4 = arith.constant 0.000000e+00 : f32
    %11 = vector.broadcast %cst_4 : f32 to vector<8x32xf32>
    %12 = arith.select %10, %0, %11 : vector<8x32xi1>, vector<8x32xf32>
    %cst_5 = arith.constant dense<0.000000e+00> : vector<8xf32>
    %13 = vector.multi_reduction <add>, %12, %cst_5 [1] : vector<8x32xf32> to vector<8xf32>
    %14 = vector.shape_cast %13 : vector<8xf32> to vector<8x1xf32>
    %cst_6 = arith.constant 0.0032258064 : f32
    %15 = vector.broadcast %cst_6 : f32 to vector<8x1xf32>
    %16 = arith.mulf %15, %8 : vector<8x1xf32>
    %cst_7 = arith.constant 0.896774172 : f32
    %17 = vector.broadcast %cst_7 : f32 to vector<8x1xf32>
    %18 = arith.mulf %17, %14 : vector<8x1xf32>
    %19 = arith.addf %16, %18 : vector<8x1xf32>
    %cst_8 = arith.constant 0.000000e+00 : f32
    %20 = vector.broadcast %cst_8 : f32 to vector<8x1xf32>
    %21 = arith.select %3, %19, %20 : vector<8x1xi1>, vector<8x1xf32>
    %22 = vector.shape_cast %21 : vector<8x1xf32> to vector<1x8x1xf32>
    %cst_9 = arith.constant dense<0.000000e+00> : vector<1xf32>
    %23 = vector.multi_reduction <add>, %22, %cst_9 [1, 2] : vector<1x8x1xf32> to vector<1xf32>
    %24 = vector.shape_cast %23 : vector<1xf32> to vector<1x1x1xf32>
    %25 = vector.extract %24[0, 0, 0] : f32 from vector<1x1x1xf32>
    %26 = vector.broadcast %25 : f32 to vector<1x8x128xf32>
    %c0_10 = arith.constant 0 : index
    %c0_11 = arith.constant 0 : index
    %c0_12 = arith.constant 0 : index
    %27 = vector.load %arg3[%c0_10, %c0_11, %c0_12] : memref<1x8x128xf32, #tpu.memory_space<vmem>>, vector<1x8x128xf32>
    tpu.vector_store %arg3[%c0_10, %c0_11, %c0_12], %26 {strides = array<i32>} : memref<1x8x128xf32, #tpu.memory_space<vmem>>, vector<1x8x128xf32>,
    return
  }
  func.func @transform_0(%arg0: i32) -> (i32, i32) {
    %c0_i32 = arith.constant 0 : i32
    %c0_i32_0 = arith.constant 0 : i32
    return %arg0, %c0_i32 : i32, i32
  }
  func.func @transform_1(%arg0: i32) -> (i32, i32) {
    %c0_i32 = arith.constant 0 : i32
    %c0_i32_0 = arith.constant 0 : i32
    return %arg0, %c0_i32 : i32, i32
  }
  func.func @transform_2(%arg0: i32) -> (i32, i32, i32) {
    %c0_i32 = arith.constant 0 : i32
    %c0_i32_0 = arith.constant 0 : i32
    %c0_i32_1 = arith.constant 0 : i32
    return %arg0, %c0_i32, %c0_i32_0 : i32, i32, i32
  }
}

</mosaic_0001>

<bundles_post_ra>
// kernel: tpu_custom_call.1
= control target key start
LH: loop header
LB: loop body
LE: loop exit
PB: predicated region body
PF: predicated region fallthrough
CT: control target
= control target key end

     0   :  { %7 = vsyncpa [#allocation3], 0  ;;  %s513_s0 = inlined_call_operand.vmem [shape: f32[16,32], index: 0, kind: input, shape index: {}]   ;;  %s514_s1 = inlined_call_operand.vmem [shape: s32[16,1], index: 1, kind: input, shape index: {}]   ;;  %s515_s2 = inlined_call_operand.hbm [shape: f32[2,8,128], index: 2, kind: output, shape index: {}]  }
   0x1   :  { %9 = vsyncpa [#allocation3 + $0x1], 0  ;;  %s410_s9 = smov 0   ;;  %s412_s10 = smov 0  }
   0x2   :  { %s414_s11 = smov 0   ;;  %s416_s12 = smov 0  }
   0x3 LB: > { %s431_s13 = sadd.s32 4294967295, %s391_s12   ;;  %s275_s14 = sadd.s32 4294967294, %s391_s12   ;;  %s391_s12 = sphi %s416_s12, %s521_s12   ;;  %s387_s11 = sphi %s414_s11, %s520_s11   ;;  %s383_s10 = sphi %s412_s10, %s519_s10   ;;  %s379_s9 = sphi %s410_s9, %s518_s9  }
   0x4   : > { %s435_s15 = sadd.s32 1, %s391_s12   ;;  %s74_s16 = sadd.s32 1, %s387_s11 }
   0x5   : > { %s71_s17 = ssub.s32 %s391_s12, %s435_s15  ;;  %p84_p0 = scmp.ne.s32.totalorder %s387_s11, %s383_s10 }
   0x6   : > { %p72_p1 = scmp.eq.s32.totalorder %s71_s17, 0  ;;  %p85_p2 = scmp.eq.s32.totalorder %s431_s13, 1 }
   0x7   : > { %p90_p3 = scmp.ne.s32.totalorder %s383_s10, %s379_s9  ;;  %p91_p4 = scmp.eq.s32.totalorder %s275_s14, 1 }
   0x8   : > { %s446_s18 = scalar_select %p72_p1, %s387_s11, %s74_s16  }
   0x9   : > { %p448_p5 = por %p85_p2, %p84_p0  ;;  %p452_p6 = por %p91_p4, %p90_p3 }
   0xa   : > { %p278_p7 = scmp.ge.s32.totalorder %s391_s12, 1  ;;  %p123_p8 = scmp.lt.s32.totalorder %s391_s12, 3 }
   0xc   : > { %p124_p9 = pnand %p278_p7, %p123_p8 }
   0xd   : > { %p148_p10 = scmp.lt.s32.totalorder (!%p124_p9), %s431_s13, 1  ;;  %v393_v0 = vmov (!%p124_p9), 0   ;;  %vm161_vm0 = vcmask (!%p124_p9), 261120   ;;  %v159_v4 = vlaneseq (!%p124_p9)  ;;  %vm177_vm3 = vcmask (!%p124_p9), 7168   ;;  %s145_s29 = sand.u32 (!%p124_p9), 1, %s383_s10  }
   0xe   : > { %127 = sbr.rel (%p124_p9) target bundleno = 524 (0x20c), region = 28  ;;  %328 = vset.pattern.permute.xlu0 (!%p124_p9), %v393_v0  ;;  %s279_s30 = sshll.u32 (!%p124_p9), %s145_s29, 3 }
   0xf   : > { %v160_v5 = vand.u32 (!%p124_p9), 127, %v159_v4  ;;  %s147_s3 = scalar_lea.vmem (!%p124_p9), [#allocation2], %s279_s30  ;;  %s283_s5 = sshll.u32 (!%p124_p9), %s431_s13, 7 }
  0x10   : > { %s204_s4 = sshll.u32 (!%p124_p9), %s147_s3, 4  ;;  %s473_s14 = scalar_lea.hbm (!%p124_p9), %s515_s2, %s283_s5  ;;  %s468_s4 = int_to_ptr.vmem [resolvable:$true] %s204_s4 }
  0x11   : > { %s191_s16 = scalar_lea.sflag (!%p124_p9), [#allocation3], %s145_s29  ;;  %s329_s17 = scalar_lea.vmem (!%p124_p9), %s468_s4, 128 }
  0x12   : > { %p330_p11 = scmp.ne.s32.totalorder (!%p124_p9), %s468_s4, %s329_s17 }
  0x14   : > { %p331_p12 = pnand (!%p124_p9), %p330_p11, %p448_p5 }
  0x15   : > { %s149_s21 = scalar_select %p148_p10, %s431_s13, 1 }
  0x16   : > { %p332_p13 = pneg %p331_p12  ;;  %s394_s13 = smov [#allocation2]  }
  0x17   : > { %s280_s22 = sshll.u32 %s149_s21, 3  ;;  %s333_s21 = sshll.u32 %s394_s13, 4  ;;  %s334_s21 = int_to_ptr.vmem [resolvable:$false] %s333_s21 }
  0x18   : > { %s155_s25 = scalar_lea.vmem %s514_s1, %s280_s22  ;;  %s151_s28 = scalar_lea.vmem %s513_s0, %s280_s22 }
  0x19   : > { %v157_v1 = vld [vmem:[%s155_s25] sm:$0xff]  ;;  %s335_s22 = scalar_lea.vmem %s334_s21, 256  ;;  %p336_p0 = scmp.lt.s32.totalorder %s468_s4, %s334_s21 }
  0x1a   : > { %166 = vperm.xlu0 %328, %v157_v1   ;;  %v156_v2 = vld [vmem:[%s151_s28] sm:$0xff]  ;;  %vm158_vm2 = vcmp.ne.s32.totalorder %v157_v1, 0  ;;  %p337_p1 = scmp.lt.s32.totalorder %s335_s22, %s329_s17 }
  0x1b   : > { %v162_v3 = vsel %vm161_vm0, %v156_v2, 0.0 }
  0x1c   : > { %p338_p2 = por %p337_p1, %p336_p0 }
  0x1e   : > { %p339_p3 = pnand %p338_p2, %p332_p13 }
  0x39   : > { %163 = vadd.xlane.f32.xlu0 %v162_v3 }
  0x99   : > { %v167_v6 = vpop.permute.xlu0 %166 }
  0x9a   : > { %vm168_vm1 = vcmp.eq.s32.totalorder %v160_v5, %v167_v6 }
  0x9b   : > { %v169_v7 = vsel %vm168_vm1, %v156_v2, 0.0 }
  0x9c   : > { %v170_v8 = vsel %vm161_vm0, %v169_v7, 0.0 }
  0x9d   : > { %171 = vadd.xlane.f32.xlu1 %v170_v8 }
  0xc6   : > { %v164_v9 = vpop.xlane.xlu0 %163 }
  0xc7   : > { %v173_v10 = vmul.f32 0.0032258064, %v164_v9 }
 0x12a   : > { %v172_v11 = vpop.xlane.xlu1 %171 }
 0x12b   : > { %v174_v12 = vmul.f32 0.8967742, %v172_v11 }
 0x12d   : > { %v175_v13 = vadd.f32 %v174_v12, %v173_v10 }
 0x12f   : > { %v176_v14 = vsel %vm158_vm2, %v175_v13, 0.0 }
 0x130   : > { %v178_v15 = vsel %vm177_vm3, %v176_v14, 0.0 }
 0x131   : > { %179 = vadd.xlane.f32.xlu1 %v178_v15 }
 0x1be   : > { %v180_v16 = vpop.xlane.xlu1 %179 }
 0x1bf   : > { %v181_v17 = vrot.slane %v180_v16, 4 }
 0x1c1   : > { %v182_v18 = vadd.f32 %v181_v17, %v180_v16 }
 0x1c3   : > { %v183_v19 = vrot.slane %v182_v18, 2 }
 0x1c5   : > { %v184_v20 = vadd.f32 %v183_v19, %v182_v18 }
 0x1c7   : > { %v185_v21 = vrot.slane %v184_v20, 1 }
 0x1c9   : > { %v186_v22 = vadd.f32 %v185_v21, %v184_v20 }
 0x1cb   : > { %286 = vpush %v186_v22 }
 0x1fc   : > { %s287_s6 = spop %286 }
 0x1fd   : > { %v188_v23 = vstv %s287_s6 }
 0x1fe   : > { %189 = vst [vmem:[%s147_s3] sm:$0xff] %v188_v23 }
 0x1ff   : > { %342 = shalt.err (!%p339_p3)
}
 0x200   : > { %s343_s23 = scalar_lea.hbm %s473_s14, 128  ;;  %s347_s26 = scalar_lea.hbm %s515_s2, 256 }
 0x201   : > { %p344_p4 = scmp.ne.s32.totalorder %s473_s14, %s343_s23  ;;  %p348_p9 = scmp.lt.u32.totalorder %s473_s14, %s515_s2 }
 0x202   : > { %p349_p10 = scmp.lt.u32.totalorder %s347_s26, %s343_s23  ;;  %p351_p12 = scmp.lt.u32.totalorder %s343_s23, %s473_s14 }
 0x203   : > { %p345_p7 = pnand %p344_p4, %p448_p5 }
 0x204   : > { %p350_p11 = por %p349_p10, %p348_p9 }
 0x205   : > { %p346_p8 = pneg %p345_p7 }
 0x206   : > { %p352_p13 = por %p351_p12, %p350_p11 }
 0x208   : > { %p353_p0 = pnand %p352_p13, %p346_p8 }
 0x20a   : > { %356 = shalt.err (!%p353_p0)
}
 0x20b   : > { %288 = dma.vmem_to_hbm [thread:$0]  (%p448_p5), %s468_s4, 128, %s473_s14, %s191_s16  }
 0x20c PF: > { %p294_p1 = scmp.ge.s32.totalorder %s391_s12, 2  ;;  %s216_s29 = sand.u32 1, %s379_s9  }
 0x20d   : > { %s217_s30 = scalar_lea.sflag [#allocation3], %s216_s29 }
 0x20e   : > { %p291_p2 = pnand %p294_p1, %p452_p6 }
 0x210   : > { %374 = dma.done.wait (!%p291_p2), %s217_s30, 128  }
 0x211   : > { %376 = vsyncadd (!%p291_p2), %s217_s30, 4294967168  ;;  %p12_p3 = scmp.ge.s32.totalorder %s435_s15, 4   ;;  %s518_s9 = smov %s383_s10 }
 0x212   : > { %s519_s10 = smov %s387_s11  ;;  %s520_s11 = smov %s446_s18 }
 0x213   : > { %s521_s12 = smov %s435_s15  ;;  %14 = sbr.rel (!%p12_p3) target bundleno = 3 (0x3), region = 66 }
 0x21a   :  { %222 = vsyncpa [#allocation3], 1 }
 0x21b   :  { %224 = vsyncpa [#allocation3 + $0x1], 1 }

</bundles_post_ra>
